<compile_context>
chip_gen: v7x
topology: tpu7x:2x2x1
jax: 0.10.0
libtpu: 0.0.40
codegen_flags: <defaults>
</compile_context>

<pallas_src>
import jax
import jax.numpy as jnp
from jax import lax
from jax.experimental import pallas as pl
from jax.experimental.pallas import tpu as pltpu

NEG_SLOPE = 0.01  # nn.LeakyReLU default negative_slope


def _leaky_relu(x):
    return jnp.where(x > 0, x, NEG_SLOPE * x)


def discriminator_kernel(x1_ref, x2_ref, w1_ref, b1_ref, w2_ref, b2_ref, o_ref):
    """One batch tile of: leaky(leaky(cat(x1,x2) @ W1.T + b1) @ W2.T + b2)."""
    F_in = x1_ref.shape[1]
    # Contract the feature axis of both operands: (TB,F) . (O,F) -> (TB,O).
    dn = (((1,), (1,)), ((), ()))

    # torch.cat((x1, x2), dim=1) @ W1.T == x1 @ W1[:, :F].T + x2 @ W1[:, F:].T
    # Static, lane-aligned ref slices; no materialized transpose anywhere.
    h = lax.dot_general(x1_ref[...], w1_ref[:, :F_in], dn,
                        preferred_element_type=jnp.float32)
    h = h + lax.dot_general(x2_ref[...], w1_ref[:, F_in:], dn,
                            preferred_element_type=jnp.float32)
    h = _leaky_relu(h + b1_ref[...])

    if o_ref.shape[-1] == 1:
        # OUT == 1: a single-column matmul wastes the MXU and forces masked
        # stores -> do it on the VPU (+ lane reduce). b2 is a scalar in SMEM.
        y = jnp.sum(h * w2_ref[...], axis=-1, keepdims=True) + b2_ref[0]
    else:
        y = lax.dot_general(h, w2_ref[...], dn,
                            preferred_element_type=jnp.float32) + b2_ref[...]

    o_ref[...] = _leaky_relu(y).astype(o_ref.dtype)


def discriminator_forward(x1, x2, w1, b1, w2, b2, *, batch_tile=256):
    """x1, x2: (B, F).  w1: (F, 2F) torch (out,in).  b1: (F,).  w2: (OUT, F).  b2: (OUT,)."""
    B, F = x1.shape
    OUT = w2.shape[0]

    TB = min(B, batch_tile)
    nb = pl.cdiv(B, TB)

    b1r = b1.reshape(1, F)  # metadata-only reshape; weights are untouched

    if OUT == 1:
        b2_arg = b2  # (1,) scalar -> SMEM, read as b2_ref[0]
        b2_spec = pl.BlockSpec(memory_space=pltpu.MemorySpace.SMEM)
    else:
        b2_arg = b2.reshape(1, OUT)
        b2_spec = pl.BlockSpec((1, OUT), lambda i: (0, 0))

    def act_spec():
        return pl.BlockSpec((TB, F), lambda i: (i, 0))

    def const_spec(shape):
        return pl.BlockSpec(shape, lambda i: (0,) * len(shape))

    return pl.pallas_call(
        discriminator_kernel,
        out_shape=jax.ShapeDtypeStruct((B, OUT), jnp.float32),
        grid=(nb,),
        in_specs=[
            act_spec(),                 # x1 tile (pipelined over batch)
            act_spec(),                 # x2 tile
            const_spec((F, 2 * F)),     # w1: VMEM-resident across the grid
            const_spec((1, F)),         # b1
            const_spec((OUT, F)),       # w2
            b2_spec,                    # b2 (SMEM scalar when OUT == 1)
        ],
        out_specs=pl.BlockSpec((TB, OUT), lambda i: (i, 0)),
        compiler_params=pltpu.CompilerParams(
            dimension_semantics=("parallel",),  # shard batch over v7x's 2 TCs
        ),
    )(x1, x2, w1, b1r, w2, b2_arg)


def _reference(x1, x2, w1, b1, w2, b2):
    x = jnp.concatenate([x1, x2], axis=1)
    h = x @ w1.T + b1
    h = jnp.where(h > 0, h, NEG_SLOPE * h)
    y = h @ w2.T + b2
    return jnp.where(y > 0, y, NEG_SLOPE * y)


if __name__ == "__main__":
    B = 8            # batch
    F = 128          # in_features (small, lane-aligned)
    OUT = 1          # outputs

    key = jax.random.PRNGKey(0)
    k1, k2, k3, k4, k5, k6 = jax.random.split(key, 6)

    x1 = jax.random.normal(k1, (B, F), dtype=jnp.float32)
    x2 = jax.random.normal(k2, (B, F), dtype=jnp.float32)

    # Deterministic nn.Linear-style init: U(-1/sqrt(fan_in), 1/sqrt(fan_in))
    bnd1 = 1.0 / jnp.sqrt(2.0 * F)
    w1 = jax.random.uniform(k3, (F, 2 * F), minval=-bnd1, maxval=bnd1,
                            dtype=jnp.float32)
    b1 = jax.random.uniform(k4, (F,), minval=-bnd1, maxval=bnd1,
                            dtype=jnp.float32)
    bnd2 = 1.0 / jnp.sqrt(float(F))
    w2 = jax.random.uniform(k5, (OUT, F), minval=-bnd2, maxval=bnd2,
                            dtype=jnp.float32)
    b2 = jax.random.uniform(k6, (OUT,), minval=-bnd2, maxval=bnd2,
                            dtype=jnp.float32)

    y = discriminator_forward(x1, x2, w1, b1, w2, b2)
    jax.block_until_ready(y)

    y_ref = _reference(x1, x2, w1, b1, w2, b2)
    assert y.shape == (B, OUT)
    assert jnp.allclose(y, y_ref, atol=1e-4, rtol=1e-5), "mismatch vs reference"

    print("KERNEL_OK")
</pallas_src>

<mosaic_0001>
module attributes {stable_mosaic.version = 11 : i64} {
  func.func @discriminator_kernel(%arg0: i32, %arg1: memref<8x128xf32, #tpu.memory_space<vmem>>, %arg2: memref<8x128xf32, #tpu.memory_space<vmem>>, %arg3: memref<128x256xf32, #tpu.memory_space<vmem>>, %arg4: memref<1x128xf32, #tpu.memory_space<vmem>>, %arg5: memref<1x128xf32, #tpu.memory_space<vmem>>, %arg6: memref<1xf32, #tpu.memory_space<smem>>, %arg7: memref<8x1xf32, #tpu.memory_space<vmem>>) attributes {dimension_semantics = [#tpu.dimension_semantics<parallel>], iteration_bounds = array<i64: 1>, scalar_prefetch = 0 : i64, scratch_operands = 0 : i64, tpu.core_type = #tpu.core_type<tc>, window_params = [{transform_indices = @transform_0, window_bounds = array<i64: 8, 128>}, {transform_indices = @transform_1, window_bounds = array<i64: 8, 128>}, {pipeline_mode = #tpu.pipeline_mode<synchronous>, transform_indices = @transform_2, window_bounds = array<i64: 128, 256>}, {pipeline_mode = #tpu.pipeline_mode<synchronous>, transform_indices = @transform_3, window_bounds = array<i64: 1, 128>}, {pipeline_mode = #tpu.pipeline_mode<synchronous>, transform_indices = @transform_4, window_bounds = array<i64: 1, 128>}, {transform_indices = @transform_5, window_bounds = array<i64: 1>}, {transform_indices = @transform_6, window_bounds = array<i64: 8, 1>}]} {
    %c0 = arith.constant 0 : index
    %c0_0 = arith.constant 0 : index
    %0 = vector.load %arg1[%c0, %c0_0] : memref<8x128xf32, #tpu.memory_space<vmem>>, vector<8x128xf32>
    %c0_1 = arith.constant 0 : index
    %c0_2 = arith.constant 0 : index
    %1 = vector.load %arg3[%c0_1, %c0_2] : memref<128x256xf32, #tpu.memory_space<vmem>>, vector<128x128xf32>
    %cst = arith.constant dense<0.000000e+00> : vector<8x128xf32>
    %2 = tpu.matmul %0, %1, %cst {dimension_numbers = #tpu.dot_dimension_numbers<[1], [1], [0], [0], [0, 0, 1, 0], [], []>} : vector<8x128xf32>, vector<128x128xf32>, vector<8x128xf32> -> vector<8x128xf32>
    %c0_3 = arith.constant 0 : index
    %c0_4 = arith.constant 0 : index
    %3 = vector.load %arg2[%c0_3, %c0_4] : memref<8x128xf32, #tpu.memory_space<vmem>>, vector<8x128xf32>
    %c0_5 = arith.constant 0 : index
    %c128 = arith.constant 128 : index
    %4 = vector.load %arg3[%c0_5, %c128] : memref<128x256xf32, #tpu.memory_space<vmem>>, vector<128x128xf32>
    %cst_6 = arith.constant dense<0.000000e+00> : vector<8x128xf32>
    %5 = tpu.matmul %3, %4, %cst_6 {dimension_numbers = #tpu.dot_dimension_numbers<[1], [1], [0], [0], [0, 0, 1, 0], [], []>} : vector<8x128xf32>, vector<128x128xf32>, vector<8x128xf32> -> vector<8x128xf32>
    %6 = arith.addf %2, %5 : vector<8x128xf32>
    %c0_7 = arith.constant 0 : index
    %c0_8 = arith.constant 0 : index
    %7 = vector.load %arg4[%c0_7, %c0_8] : memref<1x128xf32, #tpu.memory_space<vmem>>, vector<1x128xf32>
    %8 = vector.broadcast %7 : vector<1x128xf32> to vector<8x128xf32>
    %9 = arith.addf %6, %8 : vector<8x128xf32>
    %cst_9 = arith.constant 0.000000e+00 : f32
    %10 = vector.broadcast %cst_9 : f32 to vector<8x128xf32>
    %11 = arith.cmpf ogt, %9, %10 : vector<8x128xf32>
    %cst_10 = arith.constant 0.00999999977 : f32
    %12 = vector.broadcast %cst_10 : f32 to vector<8x128xf32>
    %13 = arith.mulf %12, %9 : vector<8x128xf32>
    %14 = arith.select %11, %9, %13 : vector<8x128xi1>, vector<8x128xf32>
    %c0_11 = arith.constant 0 : index
    %c0_12 = arith.constant 0 : index
    %15 = vector.load %arg5[%c0_11, %c0_12] : memref<1x128xf32, #tpu.memory_space<vmem>>, vector<1x128xf32>
    %16 = vector.broadcast %15 : vector<1x128xf32> to vector<8x128xf32>
    %17 = arith.mulf %14, %16 : vector<8x128xf32>
    %cst_13 = arith.constant dense<0.000000e+00> : vector<8xf32>
    %18 = vector.multi_reduction <add>, %17, %cst_13 [1] : vector<8x128xf32> to vector<8xf32>
    %19 = vector.shape_cast %18 : vector<8xf32> to vector<8x1xf32>
    %c0_14 = arith.constant 0 : index
    %20 = memref.load %arg6[%c0_14] : memref<1xf32, #tpu.memory_space<smem>>
    %21 = vector.broadcast %20 : f32 to vector<8x1xf32>
    %22 = arith.addf %19, %21 : vector<8x1xf32>
    %cst_15 = arith.constant 0.000000e+00 : f32
    %23 = vector.broadcast %cst_15 : f32 to vector<8x1xf32>
    %24 = arith.cmpf ogt, %22, %23 : vector<8x1xf32>
    %cst_16 = arith.constant 0.00999999977 : f32
    %25 = vector.broadcast %cst_16 : f32 to vector<8x1xf32>
    %26 = arith.mulf %25, %22 : vector<8x1xf32>
    %27 = arith.select %24, %22, %26 : vector<8x1xi1>, vector<8x1xf32>
    %c0_17 = arith.constant 0 : index
    %c0_18 = arith.constant 0 : index
    %28 = vector.load %arg7[%c0_17, %c0_18] : memref<8x1xf32, #tpu.memory_space<vmem>>, vector<8x1xf32>
    tpu.vector_store %arg7[%c0_17, %c0_18], %27 {strides = array<i32>} : memref<8x1xf32, #tpu.memory_space<vmem>>, vector<8x1xf32>,
    return
  }
  func.func @transform_0(%arg0: i32) -> (i32, i32) {
    %c0_i32 = arith.constant 0 : i32
    %c0_i32_0 = arith.constant 0 : i32
    return %arg0, %c0_i32 : i32, i32
  }
  func.func @transform_1(%arg0: i32) -> (i32, i32) {
    %c0_i32 = arith.constant 0 : i32
    %c0_i32_0 = arith.constant 0 : i32
    return %arg0, %c0_i32 : i32, i32
  }
  func.func @transform_2(%arg0: i32) -> (i32, i32) {
    %c0_i32 = arith.constant 0 : i32
    %c0_i32_0 = arith.constant 0 : i32
    %c0_i32_1 = arith.constant 0 : i32
    return %c0_i32, %c0_i32_0 : i32, i32
  }
  func.func @transform_3(%arg0: i32) -> (i32, i32) {
    %c0_i32 = arith.constant 0 : i32
    %c0_i32_0 = arith.constant 0 : i32
    %c0_i32_1 = arith.constant 0 : i32
    return %c0_i32, %c0_i32_0 : i32, i32
  }
  func.func @transform_4(%arg0: i32) -> (i32, i32) {
    %c0_i32 = arith.constant 0 : i32
    %c0_i32_0 = arith.constant 0 : i32
    %c0_i32_1 = arith.constant 0 : i32
    return %c0_i32, %c0_i32_0 : i32, i32
  }
  func.func @transform_5(%arg0: i32) -> i32 {
    %c0_i32 = arith.constant 0 : i32
    %c0_i32_0 = arith.constant 0 : i32
    return %c0_i32 : i32
  }
  func.func @transform_6(%arg0: i32) -> (i32, i32) {
    %c0_i32 = arith.constant 0 : i32
    %c0_i32_0 = arith.constant 0 : i32
    return %arg0, %c0_i32 : i32, i32
  }
}

</mosaic_0001>

<bundles_post_ra>
// kernel: tpu_custom_call.1
= control target key start
LH: loop header
LB: loop body
LE: loop exit
PB: predicated region body
PF: predicated region fallthrough
CT: control target
= control target key end

     0   :  { %12 = vsyncpa [#allocation4], 0  ;;  %s609_s0 = inlined_call_operand.hbm [shape: f32[8,128], index: 0, kind: input, shape index: {}]   ;;  %s610_s1 = inlined_call_operand.hbm [shape: f32[8,128], index: 1, kind: input, shape index: {}]   ;;  %s611_s2 = inlined_call_operand.hbm [shape: f32[128,256], index: 2, kind: input, shape index: {}]   ;;  %s612_s3 = inlined_call_operand.vmem [shape: f32[1,128], index: 3, kind: input, shape index: {}]   ;;  %s613_s4 = inlined_call_operand.vmem [shape: f32[1,128], index: 4, kind: input, shape index: {}]   ;;  %s614_s5 = inlined_call_operand.<no memory space> [shape: f32[1], index: 5, kind: input, shape index: {}]   ;;  %s615_s6 = inlined_call_operand.vmem [shape: f32[8,1], index: 6, kind: output, shape index: {}]  }
   0x1   :  { %13 = vsyncpa [#allocation6], 0  ;;  %s502_s21 = smov [#allocation5]   ;;  %s503_s23 = smov [#allocation3]  }
   0x2   :  { %s30_s22 = sshll.u32 %s502_s21, 4  ;;  %s20_s24 = sshll.u32 %s503_s23, 4  ;;  %s31_s22 = int_to_ptr.vmem [resolvable:$true] %s30_s22  ;;  %s21_s24 = int_to_ptr.vmem [resolvable:$true] %s20_s24 }
   0x3   :  { %s432_s27 = scalar_lea.hbm %s610_s1, 128 }
   0x4   :  { %p433_p0 = scmp.ne.s32.totalorder %s610_s1, %s432_s27  ;;  %p436_p1 = scmp.lt.u32.totalorder %s432_s27, %s610_s1 }
   0x6   :  { %p438_p2 = pnand %p436_p1, %p433_p0 }
   0x8   :  { %441 = shalt.err (!%p438_p2)
}
   0x9   :  { %s442_s8 = scalar_lea.vmem %s31_s22, 128  ;;  %p447_p4 = scmp.lt.s32.totalorder %s31_s22, %s31_s22 }
   0xa   :  { %p443_p3 = scmp.ne.s32.totalorder %s31_s22, %s442_s8  ;;  %p448_p5 = scmp.lt.s32.totalorder %s442_s8, %s442_s8 }
   0xc   :  { %p449_p6 = por %p448_p5, %p447_p4 }
   0xe   :  { %p450_p7 = pnand %p449_p6, %p443_p3 }
  0x10   :  { %453 = shalt.err (!%p450_p7)
}
  0x11   :  { %33 = dma.hbm_to_vmem [thread:$0]  %s610_s1, 128, %s31_s22, [#allocation6]  }
  0x12   :  { %s454_s13 = scalar_lea.hbm %s609_s0, 128 }
  0x13   :  { %p455_p8 = scmp.ne.s32.totalorder %s609_s0, %s454_s13  ;;  %p458_p9 = scmp.lt.u32.totalorder %s454_s13, %s609_s0 }
  0x15   :  { %p460_p10 = pnand %p458_p9, %p455_p8 }
  0x17   :  { %463 = shalt.err (!%p460_p10)
}
  0x18   :  { %s464_s18 = scalar_lea.vmem %s21_s24, 128  ;;  %p469_p12 = scmp.lt.s32.totalorder %s21_s24, %s21_s24 }
  0x19   :  { %p465_p11 = scmp.ne.s32.totalorder %s21_s24, %s464_s18  ;;  %p470_p13 = scmp.lt.s32.totalorder %s464_s18, %s464_s18 }
  0x1b   :  { %p471_p0 = por %p470_p13, %p469_p12 }
  0x1d   :  { %p472_p1 = pnand %p471_p0, %p465_p11 }
  0x1f   :  { %475 = shalt.err (!%p472_p1)
}
  0x20   :  { %23 = dma.hbm_to_vmem [thread:$0]  %s609_s0, 128, %s21_s24, [#allocation4]  }
  0x21   :  { %s504_s20 = smov [#allocation7]   ;;  %s476_s25 = scalar_lea.hbm %s611_s2, 4096 }
  0x22   :  { %s39_s21 = sshll.u32 %s504_s20, 4  ;;  %p477_p2 = scmp.ne.s32.totalorder %s611_s2, %s476_s25  ;;  %s40_s21 = int_to_ptr.vmem [resolvable:$true] %s39_s21 }
  0x23   :  { %p480_p3 = scmp.lt.u32.totalorder %s476_s25, %s611_s2 }
  0x25   :  { %p482_p4 = pnand %p480_p3, %p477_p2 }
  0x27   :  { %485 = shalt.err (!%p482_p4)
}
  0x28   :  { %s486_s30 = scalar_lea.vmem %s40_s21, 4096  ;;  %p491_p6 = scmp.lt.s32.totalorder %s40_s21, %s40_s21 }
  0x29   :  { %p487_p5 = scmp.ne.s32.totalorder %s40_s21, %s486_s30  ;;  %p492_p7 = scmp.lt.s32.totalorder %s486_s30, %s486_s30 }
  0x2b   :  { %p493_p8 = por %p492_p7, %p491_p6 }
  0x2d   :  { %p494_p9 = pnand %p493_p8, %p487_p5 }
  0x2f   :  { %497 = shalt.err (!%p494_p9)
}
  0x30   :  { %s505_s0 = smov 256   ;;  %s506_s24 = smov 16  }
  0x31   :  { %45 = dma.hbm_to_vmem [thread:$0]  %s611_s2, 4096, %s40_s21, [#allocation6], %s505_s0, %s505_s0, %s506_s24  }
  0x32   :  { %498 = dma.done.wait [#allocation4], 128  }
  0x33   :  { %499 = vsyncadd [#allocation4], 4294967168 }
  0x34   :  { %500 = dma.done.wait [#allocation6], 4224  }
  0x35   :  { %501 = vsyncadd [#allocation6], 4294963072  ;;  %v507_v0 = vmov 0.0|0.0   ;;  %vm508_vm0 = vmmov 0   ;;  %v509_v1 = vmov 0.0   ;;  %v79_v2 = vld [vmem:[#allocation7 + $0x8] sm:$0xff]  ;;  %v257_v63 = vstv %s614_s5 }
  0x36   :  { %376 = vmatprep.subr.bf16.mxu0 %v507_v0  ;;  %400 = vmatprep.subr.bf16.mxu1 %v507_v0  ;;  %v80_v3 = vld [vmem:[#allocation7 + $0x18] sm:$0xff]  ;;  %v62_v4 = vld [vmem:[#allocation7] sm:$0xff]  ;;  %v63_v6 = vld [vmem:[#allocation7 + $0x10] sm:$0xff]  ;;  %vm262_vm3 = vcmask 7168  }
  0x37   :  { %338 = vmatprep.mubr.msk.f32.mxu0 %vm508_vm0, %v509_v1  ;;  %373 = vmatprep.mubr.msk.f32.mxu1 %vm508_vm0, %v509_v1  ;;  %v377_v5 = vpack.c.bf16 %v80_v3, %v79_v2  ;;  %v401_v7 = vpack.c.bf16 %v63_v6, %v62_v4  ;;  %v81_v8 = vld [vmem:[#allocation7 + $0x28] sm:$0xff]  ;;  %v82_v9 = vld [vmem:[#allocation7 + $0x38] sm:$0xff]  ;;  %v64_v10 = vld [vmem:[#allocation7 + $0x20] sm:$0xff] }
  0x38   :  { %v65_v11 = vld [vmem:[#allocation7 + $0x30] sm:$0xff]  ;;  %v380_v12 = vpack.c.bf16 %v82_v9, %v81_v8  ;;  %v83_v14 = vld [vmem:[#allocation7 + $0x48] sm:$0xff]  ;;  %v84_v15 = vld [vmem:[#allocation7 + $0x58] sm:$0xff] }
  0x39   :  { %378 = vmatpush3.bf16.xpose.msra.mxu0 %v377_v5  ;;  %402 = vmatpush3.bf16.xpose.msra.mxu1 %v401_v7  ;;  %v404_v13 = vpack.c.bf16 %v65_v11, %v64_v10  ;;  %v66_v16 = vld [vmem:[#allocation7 + $0x40] sm:$0xff]  ;;  %v67_v17 = vld [vmem:[#allocation7 + $0x50] sm:$0xff]  ;;  %v383_v18 = vpack.c.bf16 %v84_v15, %v83_v14  ;;  %v85_v20 = vld [vmem:[#allocation7 + $0x68] sm:$0xff] }
  0x3a   :  { %379 = vmatprep.subr.bf16.mxu0 %v507_v0  ;;  %403 = vmatprep.subr.bf16.mxu1 %v507_v0  ;;  %v407_v19 = vpack.c.bf16 %v67_v17, %v66_v16  ;;  %v86_v21 = vld [vmem:[#allocation7 + $0x78] sm:$0xff]  ;;  %v68_v22 = vld [vmem:[#allocation7 + $0x60] sm:$0xff]  ;;  %v69_v23 = vld [vmem:[#allocation7 + $0x70] sm:$0xff] }
  0x3b   :  { %v386_v24 = vpack.c.bf16 %v86_v21, %v85_v20  ;;  %v410_v25 = vpack.c.bf16 %v69_v23, %v68_v22  ;;  %v87_v26 = vld [vmem:[#allocation7 + $0x88] sm:$0xff]  ;;  %v88_v27 = vld [vmem:[#allocation7 + $0x98] sm:$0xff]  ;;  %v70_v28 = vld [vmem:[#allocation7 + $0x80] sm:$0xff] }
  0x3c   :  { %v71_v29 = vld [vmem:[#allocation7 + $0x90] sm:$0xff]  ;;  %v389_v30 = vpack.c.bf16 %v88_v27, %v87_v26  ;;  %v89_v32 = vld [vmem:[#allocation7 + $0xa8] sm:$0xff]  ;;  %v90_v33 = vld [vmem:[#allocation7 + $0xb8] sm:$0xff] }
  0x3d   :  { %v413_v31 = vpack.c.bf16 %v71_v29, %v70_v28  ;;  %v72_v34 = vld [vmem:[#allocation7 + $0xa0] sm:$0xff]  ;;  %v73_v35 = vld [vmem:[#allocation7 + $0xb0] sm:$0xff]  ;;  %v392_v36 = vpack.c.bf16 %v90_v33, %v89_v32  ;;  %v91_v38 = vld [vmem:[#allocation7 + $0xc8] sm:$0xff] }
  0x3e   :  { %v416_v37 = vpack.c.bf16 %v73_v35, %v72_v34  ;;  %v92_v39 = vld [vmem:[#allocation7 + $0xd8] sm:$0xff]  ;;  %v74_v40 = vld [vmem:[#allocation7 + $0xc0] sm:$0xff]  ;;  %v75_v41 = vld [vmem:[#allocation7 + $0xd0] sm:$0xff] }
  0x3f   :  { %v395_v42 = vpack.c.bf16 %v92_v39, %v91_v38  ;;  %v419_v43 = vpack.c.bf16 %v75_v41, %v74_v40  ;;  %v93_v44 = vld [vmem:[#allocation7 + $0xe8] sm:$0xff]  ;;  %v94_v45 = vld [vmem:[#allocation7 + $0xf8] sm:$0xff]  ;;  %v76_v46 = vld [vmem:[#allocation7 + $0xe0] sm:$0xff] }
  0x40   :  { %v77_v47 = vld [vmem:[#allocation7 + $0xf0] sm:$0xff]  ;;  %v398_v48 = vpack.c.bf16 %v94_v45, %v93_v44  ;;  %v78_v50 = vld [vmem:[#allocation5] sm:$0xff] }
  0x41   :  { %381 = vmatpush3.bf16.xpose.msra.mxu0 %v380_v12  ;;  %405 = vmatpush3.bf16.xpose.msra.mxu1 %v404_v13  ;;  %v422_v49 = vpack.c.bf16 %v77_v47, %v76_v46  ;;  %v61_v51 = vld [vmem:[#allocation3] sm:$0xff] }
  0x42   :  { %382 = vmatprep.subr.bf16.mxu0 %v507_v0  ;;  %406 = vmatprep.subr.bf16.mxu1 %v507_v0  ;;  %v270_v54 = vld [vmem:[%s612_s3] ss:$0 sm:$0xff] }
  0x43   :  { %v271_v60 = vld [vmem:[%s613_s4] ss:$0 sm:$0xff] }
  0x49   :  { %384 = vmatpush3.bf16.xpose.msra.mxu0 %v383_v18  ;;  %408 = vmatpush3.bf16.xpose.msra.mxu1 %v407_v19 }
  0x4a   :  { %385 = vmatprep.subr.bf16.mxu0 %v507_v0  ;;  %409 = vmatprep.subr.bf16.mxu1 %v507_v0 }
  0x51   :  { %387 = vmatpush3.bf16.xpose.msra.mxu0 %v386_v24  ;;  %411 = vmatpush3.bf16.xpose.msra.mxu1 %v410_v25 }
  0x52   :  { %388 = vmatprep.subr.bf16.mxu0 %v507_v0  ;;  %412 = vmatprep.subr.bf16.mxu1 %v507_v0 }
  0x59   :  { %390 = vmatpush3.bf16.xpose.msra.mxu0 %v389_v30  ;;  %414 = vmatpush3.bf16.xpose.msra.mxu1 %v413_v31 }
  0x5a   :  { %391 = vmatprep.subr.bf16.mxu0 %v507_v0  ;;  %415 = vmatprep.subr.bf16.mxu1 %v507_v0 }
  0x61   :  { %393 = vmatpush3.bf16.xpose.msra.mxu0 %v392_v36  ;;  %417 = vmatpush3.bf16.xpose.msra.mxu1 %v416_v37 }
  0x62   :  { %394 = vmatprep.subr.bf16.mxu0 %v507_v0  ;;  %418 = vmatprep.subr.bf16.mxu1 %v507_v0 }
  0x69   :  { %396 = vmatpush3.bf16.xpose.msra.mxu0 %v395_v42  ;;  %420 = vmatpush3.bf16.xpose.msra.mxu1 %v419_v43 }
  0x6a   :  { %397 = vmatprep.subr.bf16.mxu0 %v507_v0  ;;  %421 = vmatprep.subr.bf16.mxu1 %v507_v0 }
  0x71   :  { %399 = vmatpush3.bf16.xpose.msra.mxu0 %v398_v48  ;;  %423 = vmatpush3.bf16.xpose.msra.mxu1 %v422_v49 }
  0x78   :  { %339 = vmatmul.mubr.f32.vlgmr.msra.gmra.mrb[0].mxu0 %v78_v50  ;;  %374 = vmatmul.mubr.f32.vlgmr.msra.gmra.mrb[0].mxu1 %v61_v51 }
 0x14b   :  { %v161_v52 = vpop.f32.mrb[0].mxu0  ;;  %v231_v53 = vpop.f32.mrb[0].mxu1 }
 0x14c   :  { %v340_v55 = vpop.f32.mrb[1].mxu0  ;;  %v232_v56 = vadd.f32 %v231_v53, %v161_v52  ;;  %v375_v57 = vpop.f32.mrb[1].mxu1 }
 0x14e   :  { %v242_v58 = vadd.f32 %v270_v54, %v232_v56 }
 0x150   :  { %vm243_vm1 = vcmp.gt.f32.partialorder %v242_v58, 0.0  ;;  %v244_v59 = vmul.f32 0.01, %v242_v58 }
 0x152   :  { %v245_v61 = vsel %vm243_vm1, %v242_v58, %v244_v59 }
 0x153   :  { %v253_v62 = vmul.f32 %v271_v60, %v245_v61 }
 0x155   :  { %254 = vadd.xlane.f32.xlu0 %v253_v62 }
 0x1e2   :  { %v255_v0 = vpop.xlane.xlu0 %254 }
 0x1e3   :  { %v258_v1 = vadd.f32 %v257_v63, %v255_v0 }
 0x1e5   :  { %vm259_vm2 = vcmp.gt.f32.partialorder %v258_v1, 0.0  ;;  %v260_v2 = vmul.f32 0.01, %v258_v1 }
 0x1e7   :  { %v261_v3 = vsel %vm259_vm2, %v258_v1, %v260_v2 }
 0x1e8   :  { %263 = vst.msk [vmem:[%s615_s6] sm:$0xff] %vm262_vm3, %v261_v3 }
 0x1e9   :  { %268 = vsyncpa [#allocation4], 1 }
 0x1ea   :  { %269 = vsyncpa [#allocation6], 1 }

</bundles_post_ra>
